<compile_context>
chip_gen: v6e
topology: v6e:2x2x1
jax: 0.10.0
libtpu: 0.0.40
codegen_flags: <defaults>
</compile_context>

<pallas_src>
from typing import NamedTuple, List, Tuple

import jax
import jax.numpy as jnp
from jax import lax
from jax.experimental import pallas as pl
from jax.experimental.pallas import tpu as pltpu


# ----------------------------------------------------------------------------
# Pallas kernel: per-level grid anchor generation
# ----------------------------------------------------------------------------
def _row_tile(h: int) -> int:
    """Row-tile height: full H when small, else a multiple-of-8 divisor of H."""
    if h <= 256 or h % 8 != 0:
        return h
    for t in (256, 128, 64, 32, 16, 8):
        if h % t == 0:
            return t
    return h


def grid_anchors_level(base_anchors, grid_h, grid_w, stride_h, stride_w):
    """Anchors for one feature level -> (grid_h*grid_w*A, 4) float32."""
    base = jnp.asarray(base_anchors, jnp.float32)
    A = int(base.shape[0])
    A4 = A * 4
    LW = grid_w * A4                      # lane width of the dense output layout

    # ---- lane-only precompute (tiny, built once per level in the wrapper) ----
    # lane index = x*A*4 + a*4 + c   (c fastest; c in {x1,y1,x2,y2})
    coord = jnp.tile(jnp.arange(4, dtype=jnp.int32), A * grid_w)        # c per lane
    xs = jnp.repeat(jnp.arange(grid_w, dtype=jnp.float32), A4)          # x per lane
    base_tiled = jnp.tile(base.reshape(-1), grid_w)                     # base[a, c] per lane
    even = (coord % 2) == 0
    lane_const = (base_tiled + jnp.where(even, xs * float(stride_w), 0.0)
                  ).astype(jnp.float32).reshape(1, LW)
    lane_yscale = jnp.where(even, 0.0, float(stride_h)).astype(jnp.float32).reshape(1, LW)

    TH = _row_tile(grid_h)
    n_tiles = grid_h // TH

    def kernel(const_ref, yscale_ref, out_ref):
        # out[y, lane] = lane_const[lane] + y * lane_yscale[lane]
        y0 = (pl.program_id(0) * TH).astype(jnp.float32)
        y = lax.broadcasted_iota(jnp.int32, (TH, LW), 0).astype(jnp.float32) + y0
        out_ref[...] = const_ref[...] + y * yscale_ref[...]

    out = pl.pallas_call(
        kernel,
        grid=(n_tiles,),
        in_specs=[pl.BlockSpec((1, LW), lambda i: (0, 0)),
                  pl.BlockSpec((1, LW), lambda i: (0, 0))],
        out_specs=pl.BlockSpec((TH, LW), lambda i: (i, 0)),
        out_shape=jax.ShapeDtypeStruct((grid_h, LW), jnp.float32),
        compiler_params=pltpu.CompilerParams(dimension_semantics=("parallel",)),
    )(lane_const, lane_yscale)
    # (H, W*A*4) -> (H*W*A, 4): pure row-major reshape, matches torch row order.
    return out.reshape(-1, 4)


# ----------------------------------------------------------------------------
# AnchorGenerator module (glue in plain JAX)
# ----------------------------------------------------------------------------
class ImageList(NamedTuple):
    tensors: jnp.ndarray                       # (B, C, H, W)
    image_sizes: List[Tuple[int, int]]         # per-image (h, w)


class AnchorGenerator:
    def __init__(self, sizes=(128, 256, 512), aspect_ratios=(0.5, 1.0, 2.0)):
        if not isinstance(sizes[0], (list, tuple)):
            sizes = tuple((s,) for s in sizes)
        if not isinstance(aspect_ratios[0], (list, tuple)):
            aspect_ratios = (aspect_ratios,) * len(sizes)
        assert len(sizes) == len(aspect_ratios)
        self.sizes = sizes
        self.aspect_ratios = aspect_ratios
        self.cell_anchors = None

    @staticmethod
    def generate_anchors(scales, aspect_ratios, dtype=jnp.float32):
        scales = jnp.asarray(scales, dtype=dtype)
        ar = jnp.asarray(aspect_ratios, dtype=dtype)
        h_ratios = jnp.sqrt(ar)
        w_ratios = 1.0 / h_ratios
        ws = (w_ratios[:, None] * scales[None, :]).reshape(-1)
        hs = (h_ratios[:, None] * scales[None, :]).reshape(-1)
        base = jnp.stack([-ws, -hs, ws, hs], axis=1) / 2
        return jnp.round(base)          # round-half-to-even, same as torch.round

    def set_cell_anchors(self, dtype):
        if self.cell_anchors is not None:
            return
        self.cell_anchors = [
            self.generate_anchors(s, a, dtype)
            for s, a in zip(self.sizes, self.aspect_ratios)
        ]

    def num_anchors_per_location(self):
        return [len(s) * len(a) for s, a in zip(self.sizes, self.aspect_ratios)]

    def __call__(self, image_list: ImageList, feature_maps):
        grid_sizes = [fm.shape[-2:] for fm in feature_maps]
        image_size = image_list.tensors.shape[-2:]
        strides = [(image_size[0] // g[0], image_size[1] // g[1]) for g in grid_sizes]
        self.set_cell_anchors(jnp.float32)

        anchors_over_all_feature_maps = [
            grid_anchors_level(base, gh, gw, sh, sw)
            for (gh, gw), (sh, sw), base in zip(grid_sizes, strides, self.cell_anchors)
        ]
        all_anchors = jnp.concatenate(anchors_over_all_feature_maps, axis=0)
        # every image gets the same concatenated anchor set (torch semantics)
        return [all_anchors for _ in image_list.image_sizes]


# ----------------------------------------------------------------------------
# Pure-JAX reference (mirrors torch grid_anchors) for a correctness check
# ----------------------------------------------------------------------------
def _ref_grid_anchors(base, gh, gw, sh, sw):
    shifts_x = jnp.arange(0, gw, dtype=jnp.float32) * sw
    shifts_y = jnp.arange(0, gh, dtype=jnp.float32) * sh
    shift_y, shift_x = jnp.meshgrid(shifts_y, shifts_x, indexing="ij")
    shift_x = shift_x.reshape(-1)
    shift_y = shift_y.reshape(-1)
    shifts = jnp.stack((shift_x, shift_y, shift_x, shift_y), axis=1)
    return (shifts.reshape(-1, 1, 4) + base.reshape(1, -1, 4)).reshape(-1, 4)


if __name__ == "__main__":
    key = jax.random.PRNGKey(0)
    k1, k2, k3, k4 = jax.random.split(key, 4)

    B, C = 2, 4
    IMG_H, IMG_W = 64, 64
    # padded image batch + per-image sizes (contents are irrelevant to anchors)
    image_tensors = jax.random.normal(k1, (B, 3, IMG_H, IMG_W), jnp.float32)
    image_list = ImageList(tensors=image_tensors,
                           image_sizes=[(IMG_H, IMG_W), (IMG_H - 4, IMG_W - 8)])

    # three FPN-like feature levels (NCHW)
    feature_maps = [
        jax.random.normal(k2, (B, C, 16, 16), jnp.float32),
        jax.random.normal(k3, (B, C, 8, 8), jnp.float32),
        jax.random.normal(k4, (B, C, 4, 4), jnp.float32),
    ]

    gen = AnchorGenerator(sizes=(128, 256, 512), aspect_ratios=(0.5, 1.0, 2.0))
    anchors = gen(image_list, feature_maps)
    anchors = [jax.block_until_ready(a) for a in anchors]

    # reference check
    grid_sizes = [fm.shape[-2:] for fm in feature_maps]
    strides = [(IMG_H // g[0], IMG_W // g[1]) for g in grid_sizes]
    ref_levels = [
        _ref_grid_anchors(base, gh, gw, sh, sw)
        for (gh, gw), (sh, sw), base in zip(grid_sizes, strides, gen.cell_anchors)
    ]
    ref_all = jnp.concatenate(ref_levels, axis=0)

    # this config gives len(sizes_i)*len(ars_i) = 3 anchors per location per level
    num_per_loc = gen.num_anchors_per_location()
    expected_rows = sum(g[0] * g[1] * n for g, n in zip(grid_sizes, num_per_loc))
    assert len(anchors) == B
    for a in anchors:
        assert a.shape == (expected_rows, 4), (a.shape, expected_rows)
        assert a.dtype == jnp.float32
        assert jnp.allclose(a, ref_all, atol=1e-5, rtol=1e-6)

    print("KERNEL_OK")
</pallas_src>

<mosaic_0001>
module attributes {stable_mosaic.version = 11 : i64} {
  func.func @kernel(%arg0: i32, %arg1: memref<1x192xf32, #tpu.memory_space<vmem>>, %arg2: memref<1x192xf32, #tpu.memory_space<vmem>>, %arg3: memref<16x192xf32, #tpu.memory_space<vmem>>) attributes {dimension_semantics = [#tpu.dimension_semantics<parallel>], iteration_bounds = array<i64: 1>, scalar_prefetch = 0 : i64, scratch_operands = 0 : i64, tpu.core_type = #tpu.core_type<tc>, window_params = [{pipeline_mode = #tpu.pipeline_mode<synchronous>, transform_indices = @transform_0, window_bounds = array<i64: 1, 192>}, {pipeline_mode = #tpu.pipeline_mode<synchronous>, transform_indices = @transform_1, window_bounds = array<i64: 1, 192>}, {transform_indices = @transform_2, window_bounds = array<i64: 16, 192>}]} {
    %c16_i32 = arith.constant 16 : i32
    %0 = arith.muli %arg0, %c16_i32 : i32
    %1 = arith.sitofp %0 : i32 to f32
    %2 = tpu.iota {dimensions = array<i32: 0>} : vector<16x192xi32>
    %3 = arith.sitofp %2 : vector<16x192xi32> to vector<16x192xf32>
    %4 = vector.broadcast %1 : f32 to vector<16x192xf32>
    %5 = arith.addf %3, %4 : vector<16x192xf32>
    %c0 = arith.constant 0 : index
    %c0_0 = arith.constant 0 : index
    %6 = vector.load %arg1[%c0, %c0_0] : memref<1x192xf32, #tpu.memory_space<vmem>>, vector<1x192xf32>
    %c0_1 = arith.constant 0 : index
    %c0_2 = arith.constant 0 : index
    %7 = vector.load %arg2[%c0_1, %c0_2] : memref<1x192xf32, #tpu.memory_space<vmem>>, vector<1x192xf32>
    %8 = vector.broadcast %7 : vector<1x192xf32> to vector<16x192xf32>
    %9 = arith.mulf %5, %8 : vector<16x192xf32>
    %10 = vector.broadcast %6 : vector<1x192xf32> to vector<16x192xf32>
    %11 = arith.addf %10, %9 : vector<16x192xf32>
    %c0_3 = arith.constant 0 : index
    %c0_4 = arith.constant 0 : index
    %12 = vector.load %arg3[%c0_3, %c0_4] : memref<16x192xf32, #tpu.memory_space<vmem>>, vector<16x192xf32>
    tpu.vector_store %arg3[%c0_3, %c0_4], %11 {strides = array<i32>} : memref<16x192xf32, #tpu.memory_space<vmem>>, vector<16x192xf32>,
    return
  }
  func.func @transform_0(%arg0: i32) -> (i32, i32) {
    %c0_i32 = arith.constant 0 : i32
    %c0_i32_0 = arith.constant 0 : i32
    %c0_i32_1 = arith.constant 0 : i32
    return %c0_i32, %c0_i32_0 : i32, i32
  }
  func.func @transform_1(%arg0: i32) -> (i32, i32) {
    %c0_i32 = arith.constant 0 : i32
    %c0_i32_0 = arith.constant 0 : i32
    %c0_i32_1 = arith.constant 0 : i32
    return %c0_i32, %c0_i32_0 : i32, i32
  }
  func.func @transform_2(%arg0: i32) -> (i32, i32) {
    %c0_i32 = arith.constant 0 : i32
    %c0_i32_0 = arith.constant 0 : i32
    return %arg0, %c0_i32 : i32, i32
  }
}

</mosaic_0001>

<bundles_post_ra>
// kernel: tpu_custom_call.1
= control target key start
LH: loop header
LB: loop body
LE: loop exit
PB: predicated region body
PF: predicated region fallthrough
CT: control target
= control target key end

     0   :  { %7 = vsyncpa [#allocation3], 0  ;;  %s201_s0 = inlined_call_operand.hbm [shape: f32[1,192], index: 0, kind: input, shape index: {}]   ;;  %s202_s1 = inlined_call_operand.hbm [shape: f32[1,192], index: 1, kind: input, shape index: {}]   ;;  %s203_s2 = inlined_call_operand.hbm [shape: f32[16,192], index: 2, kind: output, shape index: {}]  }
   0x1   :  { %8 = vsyncpa [#allocation6], 0 }
   0x2   :  { %9 = vsyncpa [#allocation4], 0  ;;  %s172_s9 = smov [#allocation2]   ;;  %s173_s11 = smov [#allocation5]  }
   0x3   :  { %s16_s10 = sshll.u32 %s172_s9, 4  ;;  %s26_s12 = sshll.u32 %s173_s11, 4  ;;  %s17_s10 = int_to_ptr.vmem [resolvable:$true] %s16_s10  ;;  %s27_s12 = int_to_ptr.vmem [resolvable:$true] %s26_s12 }
   0x4   :  { %s114_s13 = scalar_lea.vmem %s17_s10, 32  ;;  %p119_p1 = scmp.lt.s32.totalorder %s17_s10, %s17_s10 }
   0x5   :  { %p115_p0 = scmp.ne.s32.totalorder %s17_s10, %s114_s13  ;;  %p120_p2 = scmp.lt.s32.totalorder %s114_s13, %s114_s13 }
   0x7   :  { %p121_p3 = por %p120_p2, %p119_p1 }
   0x9   :  { %p122_p4 = pnand %p121_p3, %p115_p0 }
   0xb   :  { %125 = shalt.err (!%p122_p4)
}
   0xc   :  { %19 = dma.hbm_to_vmem [thread:$0]  %s201_s0, 32, %s17_s10, [#allocation3]  }
   0xd   :  { %s134_s16 = scalar_lea.vmem %s27_s12, 32  ;;  %p139_p6 = scmp.lt.s32.totalorder %s27_s12, %s27_s12 }
   0xe   :  { %p135_p5 = scmp.ne.s32.totalorder %s27_s12, %s134_s16  ;;  %p140_p7 = scmp.lt.s32.totalorder %s134_s16, %s134_s16 }
  0x10   :  { %p141_p8 = por %p140_p7, %p139_p6 }
  0x12   :  { %p142_p9 = pnand %p141_p8, %p135_p5 }
  0x14   :  { %145 = shalt.err (!%p142_p9)
}
  0x15   :  { %29 = dma.hbm_to_vmem [thread:$0]  %s202_s1, 32, %s27_s12, [#allocation6]  }
  0x16   :  { %166 = dma.done.wait [#allocation3], 32  }
  0x17   :  { %167 = vsyncadd [#allocation3], 4294967264 }
  0x18   :  { %168 = dma.done.wait [#allocation6], 32  }
  0x19   :  { %169 = vsyncadd [#allocation6], 4294967264  ;;  %v38_v0 = vlaneseq  ;;  %v46_v7 = vld [vmem:[#allocation2] sm:$0x3]  ;;  %v47_v8 = vld [vmem:[#allocation5] sm:$0x3] }
  0x1a   :  { %s174_s0 = smov [#allocation7]   ;;  %vm79_vm0 = vcmask 523264  }
  0x1b   :  { %v39_v1 = vshrl.u32 %v38_v0, 7  ;;  %s88_s19 = sshll.u32 %s174_s0, 4  ;;  %s89_s19 = int_to_ptr.vmem [resolvable:$true] %s88_s19 }
  0x1c   :  { %s146_s1 = scalar_lea.vmem %s89_s19, 512  ;;  %p151_p11 = scmp.lt.s32.totalorder %s89_s19, %s89_s19 }
  0x1d   :  { %v51_v2 = vsub.s32 0, %v39_v1  ;;  %v55_v3 = vsub.s32 1, %v39_v1  ;;  %v40_v4 = vadd.s32 8, %v39_v1  ;;  %v41_v5 = vcvt.s32.f32 %v39_v1  ;;  %p147_p10 = scmp.ne.s32.totalorder %s89_s19, %s146_s1  ;;  %p152_p12 = scmp.lt.s32.totalorder %s146_s1, %s146_s1 }
  0x1f   :  { %v42_v6 = vcvt.s32.f32 %v40_v4  ;;  %v52_v9 = vrot.slane %v47_v8, %v51_v2  ;;  %v56_v10 = vrot.slane %v47_v8, %v55_v3  ;;  %v67_v11 = vrot.slane %v46_v7, %v51_v2  ;;  %p153_p13 = por %p152_p12, %p151_p11 }
  0x20   :  { %v71_v12 = vrot.slane %v46_v7, %v55_v3 }
  0x21   :  { %v59_v13 = vmul.f32 %v52_v9, %v41_v5  ;;  %v60_v14 = vmul.f32 %v56_v10, %v41_v5  ;;  %v61_v15 = vmul.f32 %v52_v9, %v42_v6  ;;  %v62_v16 = vmul.f32 %v56_v10, %v42_v6  ;;  %p154_p0 = pnand %p153_p13, %p147_p10 }
  0x23   :  { %v74_v17 = vadd.f32 %v67_v11, %v59_v13  ;;  %v75_v18 = vadd.f32 %v71_v12, %v60_v14  ;;  %v76_v19 = vadd.f32 %v67_v11, %v61_v15  ;;  %v77_v20 = vadd.f32 %v71_v12, %v62_v16 }
  0x25   :  { %78 = vst [vmem:[#allocation7] sm:$0xff] %v74_v17  ;;  %80 = vst.msk [vmem:[#allocation7 + $0x8] sm:$0xff] %vm79_vm0, %v75_v18 }
  0x26   :  { %81 = vst [vmem:[#allocation7 + $0x10] sm:$0xff] %v76_v19  ;;  %82 = vst.msk [vmem:[#allocation7 + $0x18] sm:$0xff] %vm79_vm0, %v77_v20 }
  0x27   :  { %157 = shalt.err (!%p154_p0)
}
  0x28   :  { %s175_s20 = smov 256   ;;  %s176_s21 = smov 16  }
  0x29   :  { %94 = dma.vmem_to_hbm [thread:$0]  %s89_s19, 512, %s203_s2, [#allocation4], %s175_s20, %s175_s20, %s176_s21  }
  0x2a   :  { %170 = dma.done.wait [#allocation4], 512  }
  0x2b   :  { %171 = vsyncadd [#allocation4], 4294966784 }
  0x2c   :  { %98 = vsyncpa [#allocation3], 1 }
  0x2d   :  { %99 = vsyncpa [#allocation6], 1 }
  0x2e   :  { %100 = vsyncpa [#allocation4], 1 }

</bundles_post_ra>
